<compile_context>
chip_gen: v7x
topology: tpu7x:2x2x1
jax: 0.10.0
libtpu: 0.0.40
codegen_flags: <defaults>
</compile_context>

<pallas_src>
import functools
import math

import jax
import jax.numpy as jnp
from jax.experimental import pallas as pl
from jax.experimental.pallas import tpu as pltpu

_HALF_LOG_2PI = 0.5 * math.log(2.0 * math.pi)
_SQRT_HALF = math.sqrt(0.5)

_HAS_INKERNEL_RNG = hasattr(pltpu, "prng_seed") and hasattr(pltpu, "stateful_normal")


# ----------------------------------------------------------------------------
# VMEM budget / tiling helpers
# ----------------------------------------------------------------------------
@functools.lru_cache(maxsize=None)
def _vmem_limits():
    """(streaming budget for double-buffered tiles, scoped-VMEM compiler limit)."""
    phys = None
    try:
        info = pltpu.get_tpu_info()
        phys = int(getattr(info, "vmem_capacity_bytes", 0)) or None
    except Exception:
        phys = None
    if phys is None:
        phys = 64 * 1024 * 1024                       # assume the smallest (v7x)
    budget = min(phys // 4, 32 * 1024 * 1024)         # 32 MiB v5e/v6e, 16 MiB v7x
    limit = min(phys // 2, 64 * 1024 * 1024)          # raised scoped limit, headroom kept
    return budget, limit


def _compiler_params():
    _, limit = _vmem_limits()
    return pltpu.CompilerParams(dimension_semantics=("parallel",),
                                vmem_limit_bytes=limit)


def _sublane_multiple(itemsize):
    # Sub-32-bit dtypes pack along sublanes: bf16 -> 16 rows/vreg, int8/fp8 -> 32.
    return 8 * max(1, 4 // max(int(itemsize), 1))


def _legal_rows(tb, n_rows, sublane):
    """Clamp a requested row-block so the BlockSpec is legal (sublane multiple
    or the full dimension)."""
    tb, n_rows = int(tb), int(n_rows)
    if tb >= n_rows or n_rows <= sublane:
        return n_rows
    tb = max(tb, sublane)
    return (tb // sublane) * sublane


def _pick_block_rows(n_rows, bytes_per_row, *, sublane=8, prefer_two_tiles=True):
    """Row-tile size: as large as the per-kernel double-buffered VMEM budget
    allows (512+ rows keep the pipeline near the HBM roofline), split into >= 2
    tiles so both v7x TensorCores get work, rounded to the sublane multiple."""
    n_rows = int(n_rows)
    if n_rows <= sublane:
        return max(n_rows, 1)
    budget, _ = _vmem_limits()
    tb = budget // max(int(bytes_per_row), 1)
    if prefer_two_tiles:
        tb = min(tb, pl.cdiv(n_rows, 2))              # >= 2 grid tiles (v7x megacore)
    tb = min(tb, n_rows, 4096)
    tb = max(sublane, (tb // sublane) * sublane)
    if tb >= 256:
        tb = (tb // 128) * 128                        # unmasked, lane-dense output stores
    return tb


def _lane_packing(D, n_rows):
    """Rows packed per 128-lane row (r); 1 when packing does not apply."""
    if 0 < D < 128 and 128 % D == 0:
        r = 128 // D
        if n_rows % r == 0:
            return r
    return 1


# ----------------------------------------------------------------------------
# Kernels
# ----------------------------------------------------------------------------
def _logprob_lane_dense_kernel(x_ref, mean_ref, isc_ref, sel_ref, log_norm_ref,
                               out_ref):
    """log N(x; mean, std) summed over the event dim, r event-rows packed per
    128-lane row.  Output is produced already transposed, (r, tb), so the HBM
    store is lane-dense (unmasked vst when tb is a multiple of 128)."""
    x = x_ref[...].astype(jnp.float32)                 # (tb, P), upcast after load
    z = (x - mean_ref[...]) * isc_ref[...]             # isc = sqrt(0.5)/std  (VPU)
    zz = z * z                                         # 0.5 * ((x-mean)/std)^2
    # Per-group reduction + transpose fused into one matmul on the idle MXU:
    # sel is the (r, P) block-diagonal ones selector, zz.T is (P, tb).
    g = jnp.dot(sel_ref[...], zz.T, preferred_element_type=jnp.float32)  # (r, tb)
    out_ref[...] = log_norm_ref[0] - g                 # normalizer folded in-kernel


def _logprob_rowsum_kernel(x_ref, mean_ref, isc_ref, log_norm_ref, out_ref):
    """Fallback for awkward shapes: plain per-row sum with a (tb, 1) output."""
    x = x_ref[...].astype(jnp.float32)
    z = (x - mean_ref[...]) * isc_ref[...]
    out_ref[...] = log_norm_ref[0] - jnp.sum(z * z, axis=-1, keepdims=True)


def _sample_rng_kernel(seed_ref, mean_ref, std_ref, out_ref):
    """mean + std * eps with eps from the in-kernel hardware PRNG.  The only
    HBM stream is the output write."""
    i = pl.program_id(0)
    pltpu.prng_seed(seed_ref[i, 0], seed_ref[i, 1])    # independent per-tile seed
    eps = pltpu.stateful_normal(out_ref.shape, jnp.float32)
    out_ref[...] = (mean_ref[...] + std_ref[...] * eps).astype(out_ref.dtype)
    # TODO(synk): if the single EUP slot saturates (most likely on v5e), switch
    # to pltpu.prng_random_bits + a VPU-friendly normal transform or bf16 output.


def _sample_eps_kernel(eps_ref, mean_ref, std_ref, out_ref):
    """Fallback: affine transform of host-provided standard-normal noise."""
    eps = eps_ref[...].astype(jnp.float32)
    out_ref[...] = (mean_ref[...] + std_ref[...] * eps).astype(out_ref.dtype)


# ----------------------------------------------------------------------------
# log_prob wrappers
# ----------------------------------------------------------------------------
def _log_prob_lane_dense(x, mean_f, isc_f, log_norm, B, D, r, in_item, sublane,
                         block_rows):
    P = r * D
    Bp = B // r
    x_p = x.reshape(Bp, P)                             # row-major: free re-view
    mean_p = jnp.tile(mean_f, (1, r))                  # tiny (D,)-sized vectors only
    isc_p = jnp.tile(isc_f, (1, r))
    sel = jnp.repeat(jnp.eye(r, dtype=jnp.float32), D, axis=1)   # (r, P) selector

    if block_rows is not None:
        tb = _legal_rows(pl.cdiv(int(block_rows), r), Bp, sublane)
    else:
        bytes_per_row = 2 * P * in_item + 2 * r * 4    # dbl-buffered x + output
        tb = _pick_block_rows(Bp, bytes_per_row, sublane=sublane)
    num_tiles = pl.cdiv(Bp, tb)

    out = pl.pallas_call(
        _logprob_lane_dense_kernel,
        out_shape=jax.ShapeDtypeStruct((num_tiles, r, tb), jnp.float32),
        grid=(num_tiles,),
        in_specs=[
            pl.BlockSpec((tb, P), lambda i: (i, 0)),                   # x (packed)
            pl.BlockSpec((1, P), lambda i: (0, 0)),                    # mean
            pl.BlockSpec((1, P), lambda i: (0, 0)),                    # sqrt(.5)/std
            pl.BlockSpec((r, P), lambda i: (0, 0)),                    # selector
            pl.BlockSpec(memory_space=pltpu.MemorySpace.SMEM),         # log_norm
        ],
        out_specs=pl.BlockSpec((None, r, tb), lambda i: (i, 0, 0)),
        compiler_params=_compiler_params(),
    )(x_p, mean_p, isc_p, sel, log_norm)
    # out[i, j, q] is the log-prob of original row (i*tb + q)*r + j.
    return jnp.transpose(out, (0, 2, 1)).reshape(num_tiles * tb * r)[:B]


def _log_prob_rowsum(x, mean_f, isc_f, log_norm, B, D, in_item, sublane,
                     block_rows):
    if block_rows is not None:
        tb = _legal_rows(block_rows, B, sublane)
    else:
        tb = _pick_block_rows(B, 2 * D * in_item + 2 * 4, sublane=sublane)
    out = pl.pallas_call(
        _logprob_rowsum_kernel,
        out_shape=jax.ShapeDtypeStruct((B, 1), jnp.float32),
        grid=(pl.cdiv(B, tb),),
        in_specs=[
            pl.BlockSpec((tb, D), lambda i: (i, 0)),
            pl.BlockSpec((1, D), lambda i: (0, 0)),
            pl.BlockSpec((1, D), lambda i: (0, 0)),
            pl.BlockSpec(memory_space=pltpu.MemorySpace.SMEM),
        ],
        out_specs=pl.BlockSpec((tb, 1), lambda i: (i, 0)),
        compiler_params=_compiler_params(),
    )(x, mean_f, isc_f, log_norm)
    return out.reshape(B)


def gaussian_base_log_prob(x, mean, std, *, block_rows=None):
    """Independent(Normal(mean, std), 1).log_prob(x).  x: (B, D) -> (B,) f32."""
    B, D = x.shape
    mean_f = mean.astype(jnp.float32).reshape(1, D)
    isc_f = (_SQRT_HALF / std.astype(jnp.float32)).reshape(1, D)   # folds the -0.5
    log_norm = (jnp.sum(-jnp.log(std.astype(jnp.float32)))
                - D * _HALF_LOG_2PI).astype(jnp.float32).reshape(1)

    in_item = jnp.dtype(x.dtype).itemsize
    sublane = _sublane_multiple(in_item)

    r = _lane_packing(D, B)
    if (r * D) % 128 == 0:
        try:
            return _log_prob_lane_dense(x, mean_f, isc_f, log_norm, B, D, r,
                                        in_item, sublane, block_rows)
        except Exception:
            # TODO(synk): drop this guard once the MXU/transpose fast path is
            # verified on every deployed generation; fall back to the row-sum kernel.
            pass
    return _log_prob_rowsum(x, mean_f, isc_f, log_norm, B, D, in_item, sublane,
                            block_rows)


# ----------------------------------------------------------------------------
# sample wrappers
# ----------------------------------------------------------------------------
def _sample_inkernel_rng(key, batch, Bp, P, D, mean_p, std_p, dtype, out_item,
                         sublane, block_rows, r):
    if block_rows is not None:
        tb = _legal_rows(pl.cdiv(int(block_rows), r), Bp, sublane)
    else:
        # only the output is streamed (noise is generated in-kernel)
        tb = _pick_block_rows(Bp, 2 * P * out_item, sublane=sublane)
    num_tiles = pl.cdiv(Bp, tb)

    # Independent (not sequential) 62-bit seeds per tile, derived from the JAX key.
    seeds = jax.random.randint(key, (num_tiles, 2), 0,
                               jnp.iinfo(jnp.int32).max, dtype=jnp.int32)
    # TODO(synk): samples still depend on the tile size (per-tile seeding); use
    # pltpu.sample_block for fully tiling-invariant draws if reproducibility
    # across block_rows settings matters.
    out_p = pl.pallas_call(
        _sample_rng_kernel,
        out_shape=jax.ShapeDtypeStruct((Bp, P), dtype),
        grid=(num_tiles,),
        in_specs=[
            pl.BlockSpec(memory_space=pltpu.MemorySpace.SMEM),   # per-tile seeds
            pl.BlockSpec((1, P), lambda i: (0, 0)),              # mean (packed)
            pl.BlockSpec((1, P), lambda i: (0, 0)),              # std  (packed)
        ],
        out_specs=pl.BlockSpec((tb, P), lambda i: (i, 0)),
        compiler_params=_compiler_params(),
    )(seeds, mean_p, std_p)
    return out_p.reshape(batch, D)      # packed rows are contiguous -> free reshape


def _sample_host_eps(key, batch, Bp, P, D, mean_p, std_p, dtype, out_item,
                     sublane, block_rows, r):
    eps = jax.random.normal(key, (Bp, P), dtype=jnp.float32)
    if block_rows is not None:
        tb = _legal_rows(pl.cdiv(int(block_rows), r), Bp, sublane)
    else:
        tb = _pick_block_rows(Bp, 2 * P * (4 + out_item), sublane=sublane)  # eps + out
    out_p = pl.pallas_call(
        _sample_eps_kernel,
        out_shape=jax.ShapeDtypeStruct((Bp, P), dtype),
        grid=(pl.cdiv(Bp, tb),),
        in_specs=[
            pl.BlockSpec((tb, P), lambda i: (i, 0)),
            pl.BlockSpec((1, P), lambda i: (0, 0)),
            pl.BlockSpec((1, P), lambda i: (0, 0)),
        ],
        out_specs=pl.BlockSpec((tb, P), lambda i: (i, 0)),
        compiler_params=_compiler_params(),
    )(eps, mean_p, std_p)
    return out_p.reshape(batch, D)


def gaussian_base_sample(key, batch, mean, std, *, block_rows=None,
                         dtype=jnp.float32):
    """Draw `batch` samples from Independent(Normal(mean, std), 1) -> (batch, D)."""
    D = int(mean.shape[-1])
    batch = int(batch)
    r = _lane_packing(D, batch)
    P = r * D
    Bp = batch // r
    mean_p = jnp.tile(mean.astype(jnp.float32).reshape(1, D), (1, r))
    std_p = jnp.tile(std.astype(jnp.float32).reshape(1, D), (1, r))
    out_item = jnp.dtype(dtype).itemsize
    sublane = _sublane_multiple(out_item)

    if _HAS_INKERNEL_RNG:
        try:
            return _sample_inkernel_rng(key, batch, Bp, P, D, mean_p, std_p,
                                        dtype, out_item, sublane, block_rows, r)
        except Exception:
            # TODO(synk): drop this guard once pltpu.stateful_normal is confirmed
            # on every deployed jax/libtpu; fall back to host-generated noise.
            pass
    return _sample_host_eps(key, batch, Bp, P, D, mean_p, std_p, dtype,
                            out_item, sublane, block_rows, r)


# ----------------------------------------------------------------------------
# Module
# ----------------------------------------------------------------------------
class GaussianBase:
    """JAX/Pallas port of the PyTorch GaussianBase module.

    PyTorch's forward() returns td.Independent(td.Normal(mean, std), 1); here
    the returned "distribution" is this object itself, exposing the two
    operations that distribution provides, each backed by a Pallas TPU kernel.
    std must be > 0 (no validation, matching torch with validate_args off).
    """

    def __init__(self, D):
        self.D = D
        # nn.Parameter(torch.zeros(D) / torch.ones(D), requires_grad=False)
        self.mean = jnp.zeros((D,), dtype=jnp.float32)
        self.std = jnp.ones((D,), dtype=jnp.float32)

    def forward(self):
        return self

    __call__ = forward

    def log_prob(self, x, *, block_rows=None):
        return gaussian_base_log_prob(x, self.mean, self.std,
                                      block_rows=block_rows)

    def sample(self, key, batch, *, block_rows=None):
        return gaussian_base_sample(key, batch, self.mean, self.std,
                                    block_rows=block_rows)


# ----------------------------------------------------------------------------
# Pure-JAX reference
# ----------------------------------------------------------------------------
def _log_prob_ref(x, mean, std):
    z = (x - mean) / std
    return jnp.sum(-0.5 * z * z - jnp.log(std) - _HALF_LOG_2PI, axis=-1)


# ----------------------------------------------------------------------------
# Main
# ----------------------------------------------------------------------------
if __name__ == "__main__":
    D = 32      # event dimension of the base distribution
    B = 64      # batch of evaluation points / samples

    key = jax.random.PRNGKey(0)
    kx, kp1, kp2, ks1, ks2 = jax.random.split(key, 5)
    x = jax.random.normal(kx, (B, D), dtype=jnp.float32)

    base = GaussianBase(D)
    dist = base()  # mirrors forward() returning the distribution

    # --- log_prob, default parameters (zero mean, unit std), packed fast path --
    lp = jax.block_until_ready(dist.log_prob(x))
    assert lp.shape == (B,)
    assert jnp.allclose(lp, _log_prob_ref(x, base.mean, base.std),
                        atol=1e-4, rtol=1e-4)

    # --- log_prob, nonzero mean / non-unit std, explicit multi-tile grid -------
    mean_nz = 0.5 * jax.random.normal(kp1, (D,), dtype=jnp.float32)
    std_nz = 0.5 + jax.random.uniform(kp2, (D,), dtype=jnp.float32)
    lp2 = jax.block_until_ready(
        gaussian_base_log_prob(x, mean_nz, std_nz, block_rows=16))
    assert jnp.allclose(lp2, _log_prob_ref(x, mean_nz, std_nz),
                        atol=1e-3, rtol=1e-3)

    # --- log_prob with a batch that hits the unpacked fallback (partial tile) --
    x_odd = x[:50]
    lp3 = jax.block_until_ready(
        gaussian_base_log_prob(x_odd, mean_nz, std_nz, block_rows=16))
    assert lp3.shape == (50,)
    assert jnp.allclose(lp3, _log_prob_ref(x_odd, mean_nz, std_nz),
                        atol=1e-3, rtol=1e-3)

    # --- sampling (in-kernel PRNG), standard-normal base ------------------------
    smp = jax.block_until_ready(dist.sample(ks1, B))
    assert smp.shape == (B, D)
    assert bool(jnp.all(jnp.isfinite(smp)))
    # Loose distributional sanity check over B*D = 2048 draws.
    assert abs(float(jnp.mean(smp))) < 0.15
    assert abs(float(jnp.std(smp)) - 1.0) < 0.15

    # --- sampling with non-default parameters, explicit multi-tile grid ---------
    smp2 = jax.block_until_ready(
        gaussian_base_sample(ks2, B, jnp.full((D,), 3.0, jnp.float32),
                             jnp.full((D,), 0.5, jnp.float32), block_rows=16))
    assert smp2.shape == (B, D)
    assert abs(float(jnp.mean(smp2)) - 3.0) < 0.15
    assert abs(float(jnp.std(smp2)) - 0.5) < 0.15

    print("KERNEL_OK")
</pallas_src>

<mosaic_0001>
module attributes {stable_mosaic.version = 11 : i64} {
  func.func @_logprob_lane_dense_kernel(%arg0: i32, %arg1: memref<8x128xf32, #tpu.memory_space<vmem>>, %arg2: memref<1x128xf32, #tpu.memory_space<vmem>>, %arg3: memref<1x128xf32, #tpu.memory_space<vmem>>, %arg4: memref<4x128xf32, #tpu.memory_space<vmem>>, %arg5: memref<1xf32, #tpu.memory_space<smem>>, %arg6: memref<1x4x8xf32, #tpu.memory_space<vmem>>) attributes {dimension_semantics = [#tpu.dimension_semantics<parallel>], iteration_bounds = array<i64: 2>, scalar_prefetch = 0 : i64, scratch_operands = 0 : i64, tpu.core_type = #tpu.core_type<tc>, window_params = [{transform_indices = @transform_0, window_bounds = array<i64: 8, 128>}, {pipeline_mode = #tpu.pipeline_mode<synchronous>, transform_indices = @transform_1, window_bounds = array<i64: 1, 128>}, {pipeline_mode = #tpu.pipeline_mode<synchronous>, transform_indices = @transform_2, window_bounds = array<i64: 1, 128>}, {pipeline_mode = #tpu.pipeline_mode<synchronous>, transform_indices = @transform_3, window_bounds = array<i64: 4, 128>}, {transform_indices = @transform_4, window_bounds = array<i64: 1>}, {transform_indices = @transform_5, window_bounds = array<i64: 1, 4, 8>}]} {
    %c0 = arith.constant 0 : index
    %c0_0 = arith.constant 0 : index
    %0 = vector.load %arg1[%c0, %c0_0] : memref<8x128xf32, #tpu.memory_space<vmem>>, vector<8x128xf32>
    %c0_1 = arith.constant 0 : index
    %c0_2 = arith.constant 0 : index
    %1 = vector.load %arg2[%c0_1, %c0_2] : memref<1x128xf32, #tpu.memory_space<vmem>>, vector<1x128xf32>
    %2 = vector.broadcast %1 : vector<1x128xf32> to vector<8x128xf32>
    %3 = arith.subf %0, %2 : vector<8x128xf32>
    %c0_3 = arith.constant 0 : index
    %c0_4 = arith.constant 0 : index
    %4 = vector.load %arg3[%c0_3, %c0_4] : memref<1x128xf32, #tpu.memory_space<vmem>>, vector<1x128xf32>
    %5 = vector.broadcast %4 : vector<1x128xf32> to vector<8x128xf32>
    %6 = arith.mulf %3, %5 : vector<8x128xf32>
    %7 = arith.mulf %6, %6 : vector<8x128xf32>
    %c0_5 = arith.constant 0 : index
    %c0_6 = arith.constant 0 : index
    %8 = vector.load %arg4[%c0_5, %c0_6] : memref<4x128xf32, #tpu.memory_space<vmem>>, vector<4x128xf32>
    %9 = tpu.transpose %7, [1, 0] : vector<8x128xf32> -> vector<128x8xf32>
    %cst = arith.constant dense<0.000000e+00> : vector<4x8xf32>
    %10 = tpu.matmul %8, %9, %cst {dimension_numbers = #tpu.dot_dimension_numbers<[1], [0], [0], [1], [0, 0, 1, 1], [], []>} : vector<4x128xf32>, vector<128x8xf32>, vector<4x8xf32> -> vector<4x8xf32>
    %c0_7 = arith.constant 0 : index
    %11 = memref.load %arg5[%c0_7] : memref<1xf32, #tpu.memory_space<smem>>
    %12 = vector.broadcast %11 : f32 to vector<4x8xf32>
    %13 = arith.subf %12, %10 : vector<4x8xf32>
    %c0_8 = arith.constant 0 : index
    %c0_9 = arith.constant 0 : index
    %c0_10 = arith.constant 0 : index
    %14 = vector.load %arg6[%c0_8, %c0_9, %c0_10] : memref<1x4x8xf32, #tpu.memory_space<vmem>>, vector<1x4x8xf32>
    %15 = vector.shape_cast %14 : vector<1x4x8xf32> to vector<4x8xf32>
    %16 = vector.shape_cast %13 : vector<4x8xf32> to vector<1x4x8xf32>
    tpu.vector_store %arg6[%c0_8, %c0_9, %c0_10], %16 {strides = array<i32>} : memref<1x4x8xf32, #tpu.memory_space<vmem>>, vector<1x4x8xf32>,
    return
  }
  func.func @transform_0(%arg0: i32) -> (i32, i32) {
    %c0_i32 = arith.constant 0 : i32
    %c0_i32_0 = arith.constant 0 : i32
    return %arg0, %c0_i32 : i32, i32
  }
  func.func @transform_1(%arg0: i32) -> (i32, i32) {
    %c0_i32 = arith.constant 0 : i32
    %c0_i32_0 = arith.constant 0 : i32
    %c0_i32_1 = arith.constant 0 : i32
    return %c0_i32, %c0_i32_0 : i32, i32
  }
  func.func @transform_2(%arg0: i32) -> (i32, i32) {
    %c0_i32 = arith.constant 0 : i32
    %c0_i32_0 = arith.constant 0 : i32
    %c0_i32_1 = arith.constant 0 : i32
    return %c0_i32, %c0_i32_0 : i32, i32
  }
  func.func @transform_3(%arg0: i32) -> (i32, i32) {
    %c0_i32 = arith.constant 0 : i32
    %c0_i32_0 = arith.constant 0 : i32
    %c0_i32_1 = arith.constant 0 : i32
    return %c0_i32, %c0_i32_0 : i32, i32
  }
  func.func @transform_4(%arg0: i32) -> i32 {
    %c0_i32 = arith.constant 0 : i32
    %c0_i32_0 = arith.constant 0 : i32
    return %c0_i32 : i32
  }
  func.func @transform_5(%arg0: i32) -> (i32, i32, i32) {
    %c0_i32 = arith.constant 0 : i32
    %c0_i32_0 = arith.constant 0 : i32
    %c0_i32_1 = arith.constant 0 : i32
    return %arg0, %c0_i32, %c0_i32_0 : i32, i32, i32
  }
}

module attributes {stable_mosaic.version = 11 : i64} {
  func.func @_logprob_rowsum_kernel(%arg0: i32, %arg1: memref<32x32xf32, #tpu.memory_space<vmem>>, %arg2: memref<1x32xf32, #tpu.memory_space<vmem>>, %arg3: memref<1x32xf32, #tpu.memory_space<vmem>>, %arg4: memref<1xf32, #tpu.memory_space<smem>>, %arg5: memref<32x1xf32, #tpu.memory_space<vmem>>) attributes {dimension_semantics = [#tpu.dimension_semantics<parallel>], iteration_bounds = array<i64: 2>, scalar_prefetch = 0 : i64, scratch_operands = 0 : i64, tpu.core_type = #tpu.core_type<tc>, window_params = [{transform_indices = @transform_0, window_bounds = array<i64: 32, 32>}, {pipeline_mode = #tpu.pipeline_mode<synchronous>, transform_indices = @transform_1, window_bounds = array<i64: 1, 32>}, {pipeline_mode = #tpu.pipeline_mode<synchronous>, transform_indices = @transform_2, window_bounds = array<i64: 1, 32>}, {transform_indices = @transform_3, window_bounds = array<i64: 1>}, {transform_indices = @transform_4, window_bounds = array<i64: 32, 1>}]} {
    %c0 = arith.constant 0 : index
    %c0_0 = arith.constant 0 : index
    %0 = vector.load %arg1[%c0, %c0_0] : memref<32x32xf32, #tpu.memory_space<vmem>>, vector<32x32xf32>
    %c0_1 = arith.constant 0 : index
    %c0_2 = arith.constant 0 : index
    %1 = vector.load %arg2[%c0_1, %c0_2] : memref<1x32xf32, #tpu.memory_space<vmem>>, vector<1x32xf32>
    %2 = vector.broadcast %1 : vector<1x32xf32> to vector<32x32xf32>
    %3 = arith.subf %0, %2 : vector<32x32xf32>
    %c0_3 = arith.constant 0 : index
    %c0_4 = arith.constant 0 : index
    %4 = vector.load %arg3[%c0_3, %c0_4] : memref<1x32xf32, #tpu.memory_space<vmem>>, vector<1x32xf32>
    %5 = vector.broadcast %4 : vector<1x32xf32> to vector<32x32xf32>
    %6 = arith.mulf %3, %5 : vector<32x32xf32>
    %c0_5 = arith.constant 0 : index
    %7 = memref.load %arg4[%c0_5] : memref<1xf32, #tpu.memory_space<smem>>
    %8 = arith.mulf %6, %6 : vector<32x32xf32>
    %cst = arith.constant dense<0.000000e+00> : vector<32xf32>
    %9 = vector.multi_reduction <add>, %8, %cst [1] : vector<32x32xf32> to vector<32xf32>
    %10 = vector.shape_cast %9 : vector<32xf32> to vector<32x1xf32>
    %11 = vector.broadcast %7 : f32 to vector<32x1xf32>
    %12 = arith.subf %11, %10 : vector<32x1xf32>
    %c0_6 = arith.constant 0 : index
    %c0_7 = arith.constant 0 : index
    %13 = vector.load %arg5[%c0_6, %c0_7] : memref<32x1xf32, #tpu.memory_space<vmem>>, vector<32x1xf32>
    tpu.vector_store %arg5[%c0_6, %c0_7], %12 {strides = array<i32>} : memref<32x1xf32, #tpu.memory_space<vmem>>, vector<32x1xf32>,
    return
  }
  func.func @transform_0(%arg0: i32) -> (i32, i32) {
    %c0_i32 = arith.constant 0 : i32
    %c0_i32_0 = arith.constant 0 : i32
    return %arg0, %c0_i32 : i32, i32
  }
  func.func @transform_1(%arg0: i32) -> (i32, i32) {
    %c0_i32 = arith.constant 0 : i32
    %c0_i32_0 = arith.constant 0 : i32
    %c0_i32_1 = arith.constant 0 : i32
    return %c0_i32, %c0_i32_0 : i32, i32
  }
  func.func @transform_2(%arg0: i32) -> (i32, i32) {
    %c0_i32 = arith.constant 0 : i32
    %c0_i32_0 = arith.constant 0 : i32
    %c0_i32_1 = arith.constant 0 : i32
    return %c0_i32, %c0_i32_0 : i32, i32
  }
  func.func @transform_3(%arg0: i32) -> i32 {
    %c0_i32 = arith.constant 0 : i32
    %c0_i32_0 = arith.constant 0 : i32
    return %c0_i32 : i32
  }
  func.func @transform_4(%arg0: i32) -> (i32, i32) {
    %c0_i32 = arith.constant 0 : i32
    %c0_i32_0 = arith.constant 0 : i32
    return %arg0, %c0_i32 : i32, i32
  }
}

</mosaic_0001>

<bundles_post_ra>
// kernel: tpu_custom_call.1
= control target key start
LH: loop header
LB: loop body
LE: loop exit
PB: predicated region body
PF: predicated region fallthrough
CT: control target
= control target key end

     0   :  { %s794_s0 = inlined_call_operand.hbm [shape: f32[16,128], index: 0, kind: input, shape index: {}]   ;;  %s795_s1 = inlined_call_operand.vmem [shape: f32[1,128], index: 1, kind: input, shape index: {}]   ;;  %s796_s2 = inlined_call_operand.vmem [shape: f32[1,128], index: 2, kind: input, shape index: {}]   ;;  %s797_s3 = inlined_call_operand.vmem [shape: f32[4,128], index: 3, kind: input, shape index: {}]   ;;  %s798_s4 = inlined_call_operand.<no memory space> [shape: f32[1], index: 4, kind: input, shape index: {}]   ;;  %s799_s5 = inlined_call_operand.hbm [shape: f32[2,4,8], index: 5, kind: output, shape index: {}]  }
   0x1   :  { %10 = sst [smem:[#allocation2]] %s798_s4 }
   0x2   :  { %11 = vsyncpa [#allocation4], 0 }
   0x3   :  { %13 = vsyncpa [#allocation4 + $0x1], 0 }
   0x4   :  { %14 = vsyncpa [#allocation5], 0 }
   0x5   :  { %16 = vsyncpa [#allocation5 + $0x1], 0  ;;  %s623_s20 = smov 0   ;;  %s625_s21 = smov 0  }
   0x6   :  { %s627_s22 = smov 0   ;;  %s629_s23 = smov 0  }
   0x7 LB: > { %s644_s4 = sadd.s32 4294967295, %s584_s23   ;;  %s419_s24 = sadd.s32 4294967294, %s584_s23   ;;  %s584_s23 = sphi %s629_s23, %s814_s23   ;;  %s580_s22 = sphi %s627_s22, %s813_s22   ;;  %s576_s21 = sphi %s625_s21, %s812_s21   ;;  %s572_s20 = sphi %s623_s20, %s811_s20  }
   0x8   : > { %s648_s25 = sadd.s32 1, %s584_s23   ;;  %s29_s26 = sadd.s32 1, %s580_s22 }
   0x9   : > { %s26_s27 = ssub.s32 %s584_s23, %s648_s25  ;;  %p36_p0 = scmp.ne.s32.totalorder %s580_s22, %s576_s21 }
   0xa   : > { %p27_p1 = scmp.eq.s32.totalorder %s26_s27, 0  ;;  %p37_p2 = scmp.eq.s32.totalorder %s584_s23, 0 }
   0xb   : > { %p42_p3 = scmp.ne.s32.totalorder %s576_s21, %s572_s20  ;;  %p43_p4 = scmp.eq.s32.totalorder %s644_s4, 0 }
   0xc   : > { %s660_s28 = scalar_select %p27_p1, %s580_s22, %s29_s26  }
   0xd   : > { %p662_p5 = por %p37_p2, %p36_p0  ;;  %p666_p6 = por %p43_p4, %p42_p3 }
   0xe   : > { %p150_p7 = scmp.eq.s32.totalorder %s644_s4, 1  ;;  %p156_p8 = scmp.eq.s32.totalorder %s419_s24, 1 }
   0xf   : > { %p452_p10 = scmp.lt.s32.totalorder %s584_s23, 2  ;;  %s188_s8 = sand.u32 1, %s580_s22  }
  0x10   : > { %p673_p11 = por %p150_p7, %p36_p0  ;;  %p677_p12 = por %p156_p8, %p42_p3 }
  0x11   : > { %s423_s9 = sshll.u32 %s584_s23, 7  ;;  %s422_s10 = sshll.u32 %s188_s8, 3 }
  0x12   : > { %s803_s6 = scalar_select %p673_p11, 1, 0 }
  0x13   : > { %s804_s7 = scalar_select %p677_p12, 1, 0 }
  0x14   : > { %s686_s13 = scalar_lea.hbm %s794_s0, %s423_s9  ;;  %s192_s14 = scalar_lea.vmem [#allocation3], %s422_s10 }
  0x15   : > { %s199_s15 = sshll.u32 %s192_s14, 4  ;;  %p690_p13 = pnand %p452_p10, %p662_p5  ;;  %s694_s15 = int_to_ptr.vmem [resolvable:$true] %s199_s15 }
  0x16   : > { %s189_s17 = scalar_lea.sflag [#allocation4], %s188_s8  ;;  %s488_s18 = scalar_lea.hbm %s686_s13, 128 }
  0x17   : > { %p489_p2 = scmp.ne.s32.totalorder %s686_s13, %s488_s18  ;;  %p490_p3 = pneg %p690_p13 }
  0x18   : > { %s493_s26 = scalar_lea.hbm %s794_s0, 256  ;;  %p494_p5 = scmp.lt.u32.totalorder %s686_s13, %s794_s0 }
  0x19   : > { %p491_p4 = pnand %p490_p3, %p489_p2  ;;  %p495_p8 = scmp.lt.u32.totalorder %s493_s26, %s488_s18 }
  0x1a   : > { %p497_p9 = scmp.lt.u32.totalorder %s488_s18, %s686_s13 }
  0x1b   : > { %p492_p7 = pneg %p491_p4  ;;  %p496_p10 = por %p495_p8, %p494_p5 }
  0x1d   : > { %p498_p0 = por %p497_p9, %p496_p10 }
  0x1f   : > { %p499_p1 = pnand %p498_p0, %p492_p7 }
  0x21   : > { %502 = shalt.err (!%p499_p1)
}
  0x22   : > { %s503_s8 = scalar_lea.vmem %s694_s15, 128  ;;  %s586_s9 = smov [#allocation3]  }
  0x23   : > { %p504_p2 = scmp.ne.s32.totalorder %s694_s15, %s503_s8  ;;  %s508_s10 = sshll.u32 %s586_s9, 4  ;;  %s509_s10 = int_to_ptr.vmem [resolvable:$false] %s508_s10 }
  0x24   : > { %s510_s11 = scalar_lea.vmem %s509_s10, 256  ;;  %p511_p11 = scmp.lt.s32.totalorder %s694_s15, %s509_s10 }
  0x25   : > { %p506_p4 = pnand %p504_p2, %p490_p3  ;;  %p512_p5 = scmp.lt.s32.totalorder %s510_s11, %s503_s8 }
  0x27   : > { %p507_p12 = pneg %p506_p4  ;;  %p513_p8 = por %p512_p5, %p511_p11 }
  0x29   : > { %p514_p9 = pnand %p513_p8, %p507_p12 }
  0x2b   : > { %517 = shalt.err (!%p514_p9)
}
  0x2c   : > { %447 = dma.hbm_to_vmem [thread:$0]  (!%p690_p13), %s686_s13, 128, %s694_s15, %s189_s17  }
  0x2d   : > { %p806_p0 = scmp.lt.s32.totalorder %s584_s23, 3  ;;  %p807_p1 = scmp.ge.s32.totalorder %s584_s23, 1 }
  0x2f   : > { %p205_p3 = pnand %p807_p1, %p806_p0 }
  0x30   : > { %s728_s12 = sand.u32 (!%p205_p3), 1, %s576_s21  }
  0x31   : > { %208 = sbr.rel (%p205_p3) target bundleno = 296 (0x128), region = 40  ;;  %s425_s14 = sshll.u32 (!%p205_p3), %s728_s12, 3 }
  0x32   : > { %s211_s18 = scalar_lea.sflag (!%p205_p3), [#allocation4], %s728_s12  ;;  %s214_s19 = scalar_lea.vmem (!%p205_p3), [#allocation3], %s425_s14 }
  0x38   : > { %563 = dma.done.wait (%p666_p6), %s211_s18, 128  }
  0x39   : > { %565 = vsyncadd (%p666_p6), %s211_s18, 4294967168  ;;  %v587_v0 = vmov 0.0   ;;  %vm588_vm0 = vmmov 0   ;;  %v241_v1 = vld [vmem:[%s214_s19] sm:$0xff]  ;;  %s330_s26 = sld [smem:[#allocation2]]  ;;  %s426_s27 = sshll.u32 %s728_s12, 2 }
  0x3a   : > { %435 = vmatprep.subr.mxu0 %v587_v0  ;;  %437 = vmatprep.mubr.msk.f32.mxu0 %vm588_vm0, %v587_v0  ;;  %v427_v2 = vld [vmem:[%s795_s1] ss:$0 sm:$0xff]  ;;  %s430_s29 = sshll.u32 %s644_s4, 6  ;;  %s240_s8 = scalar_lea.vmem [#allocation6], %s426_s27  ;;  %vm333_vm1 = vcmask 60416  }
  0x3b   : > { %v428_v3 = vld [vmem:[%s796_s2] ss:$0 sm:$0xff]  ;;  %v249_v4 = vsub.f32 %v241_v1, %v427_v2  ;;  %s349_s9 = sshll.u32 %s240_s8, 4  ;;  %s750_s14 = scalar_lea.hbm %s799_s5, %s430_s29  ;;  %s752_s9 = int_to_ptr.vmem [resolvable:$true] %s349_s9 }
  0x3c   : > { %v259_v7 = vld [vmem:[%s797_s3] sm:$0xf]  ;;  %s336_s18 = scalar_lea.sflag [#allocation5], %s728_s12  ;;  %s518_s19 = scalar_lea.vmem %s752_s9, 64 }
  0x3d   : > { %v257_v5 = vmul.f32 %v428_v3, %v249_v4  ;;  %p519_p6 = scmp.ne.s32.totalorder %s752_s9, %s518_s19  ;;  %p808_p11 = scmp.ne.s32.totalorder %s803_s6, 0 }
  0x3e   : > { %s589_s4 = smov [#allocation6]  }
  0x3f   : > { %v258_v6 = vmul.f32 %v257_v5, %v257_v5  ;;  %v331_v8 = vstv %s330_s26  ;;  %p520_p12 = pnand %p519_p6, %p808_p11  ;;  %s522_s13 = sshll.u32 %s589_s4, 4  ;;  %s523_s13 = int_to_ptr.vmem [resolvable:$false] %s522_s13 }
  0x40   : > { %s524_s15 = scalar_lea.vmem %s523_s13, 128  ;;  %p525_p7 = scmp.lt.s32.totalorder %s752_s9, %s523_s13 }
  0x41   : > { %436 = vmatpush3.xpose.msra.mxu0 %v258_v6  ;;  %p521_p13 = pneg %p520_p12  ;;  %p526_p10 = scmp.lt.s32.totalorder %s524_s15, %s518_s19 }
  0x43   : > { %p527_p2 = por %p526_p10, %p525_p7 }
  0x44   : > { %438 = vmatmul.mubr.f32.vlgmr.msra.gmra.mrb[0].mxu0 %v259_v7 }
  0x45   : > { %p528_p4 = pnand %p527_p2, %p521_p13 }
 0x117   : > { %v326_v9 = vpop.f32.mrb[0].mxu0 }
 0x118   : > { %v332_v10 = vsub.f32 %v331_v8, %v326_v9  ;;  %v439_v11 = vpop.f32.mrb[1].mxu0 }
 0x11a   : > { %334 = vst.msk [vmem:[%s240_s8] sm:$0xf] %vm333_vm1, %v332_v10 }
 0x11b   : > { %531 = shalt.err (!%p528_p4)
}
 0x11c   : > { %s532_s12 = scalar_lea.hbm %s750_s14, 64  ;;  %s536_s30 = scalar_lea.hbm %s799_s5, 128 }
 0x11d   : > { %p533_p5 = scmp.ne.s32.totalorder %s750_s14, %s532_s12  ;;  %p537_p0 = scmp.lt.u32.totalorder %s750_s14, %s799_s5 }
 0x11e   : > { %p538_p1 = scmp.lt.u32.totalorder %s536_s30, %s532_s12  ;;  %p540_p6 = scmp.lt.u32.totalorder %s532_s12, %s750_s14 }
 0x11f   : > { %p534_p8 = pnand %p533_p5, %p808_p11 }
 0x120   : > { %p539_p3 = por %p538_p1, %p537_p0 }
 0x121   : > { %p535_p9 = pneg %p534_p8 }
 0x122   : > { %p541_p12 = por %p540_p6, %p539_p3 }
 0x124   : > { %p542_p13 = pnand %p541_p12, %p535_p9 }
 0x126   : > { %545 = shalt.err (!%p542_p13)
}
 0x127   : > { %442 = dma.vmem_to_hbm [thread:$0]  (%p808_p11), %s752_s9, 64, %s750_s14, %s336_s18  }
 0x128 PF: > { %s361_s27 = sand.u32 1, %s572_s20   ;;  %p809_p7 = scmp.ne.s32.totalorder %s804_s7, 0 }
 0x129   : > { %p810_p10 = scmp.ge.s32.totalorder %s584_s23, 2  ;;  %s362_s29 = scalar_lea.sflag [#allocation5], %s361_s27 }
 0x12b   : > { %p449_p2 = pnand %p810_p10, %p809_p7 }
 0x12d   : > { %567 = dma.done.wait (!%p449_p2), %s362_s29, 64  }
 0x12e   : > { %569 = vsyncadd (!%p449_p2), %s362_s29, 4294967232  ;;  %p19_p4 = scmp.ge.s32.totalorder %s648_s25, 4   ;;  %s811_s20 = smov %s576_s21 }
 0x12f   : > { %s812_s21 = smov %s580_s22  ;;  %s813_s22 = smov %s660_s28 }
 0x130   : > { %s814_s23 = smov %s648_s25  ;;  %21 = sbr.rel (!%p19_p4) target bundleno = 7 (0x7), region = 85 }
 0x137   :  { %367 = vsyncpa [#allocation4], 1 }
 0x138   :  { %369 = vsyncpa [#allocation4 + $0x1], 1 }
 0x139   :  { %370 = vsyncpa [#allocation5], 1 }
 0x13a   :  { %372 = vsyncpa [#allocation5 + $0x1], 1 }

// kernel: tpu_custom_call.1
= control target key start
LH: loop header
LB: loop body
LE: loop exit
PB: predicated region body
PF: predicated region fallthrough
CT: control target
= control target key end

     0   :  { %s369_s17 = smov 0   ;;  %s399_s0 = inlined_call_operand.vmem [shape: f32[64,32], index: 0, kind: input, shape index: {}]   ;;  %s400_s1 = inlined_call_operand.vmem [shape: f32[1,32], index: 1, kind: input, shape index: {}]   ;;  %s401_s2 = inlined_call_operand.vmem [shape: f32[1,32], index: 2, kind: input, shape index: {}]   ;;  %s402_s3 = inlined_call_operand.<no memory space> [shape: f32[1], index: 3, kind: input, shape index: {}]   ;;  %s403_s4 = inlined_call_operand.vmem [shape: f32[64,1], index: 4, kind: output, shape index: {}]  }
   0x1   :  { %9 = sst [smem:[#allocation2]] %s402_s3 }
   0x2 LB: > { %s312_s18 = sadd.s32 4294967295, %s339_s17   ;;  %p316_p0 = scmp.ge.s32.totalorder %s339_s17, 1  ;;  %s339_s17 = sphi %s369_s17, %s15_s17  }
   0x3   : > { %p164_p1 = scmp.lt.s32.totalorder %s339_s17, 3 }
   0x5   : > { %p165_p2 = pnand %p316_p0, %p164_p1 }
   0x6   : > { %s317_s19 = sshll.u32 (!%p165_p2), %s312_s18, 2  ;;  %v321_v0 = vld [vmem:[%s400_s1] ss:$0 sm:$0xff] (!%p165_p2)  ;;  %vm233_vm0 = vcmask (!%p165_p2), 261120   ;;  %s228_s27 = sld [smem:[#allocation2]] (!%p165_p2)  ;;  %vm251_vm1 = vcmask (!%p165_p2), 7168  }
   0x7   : > { %168 = sbr.rel (%p165_p2) target bundleno = 174 (0xae), region = 36  ;;  %p191_p3 = scmp.lt.s32.totalorder (!%p165_p2), %s317_s19, 7  ;;  %v322_v1 = vld [vmem:[%s401_s2] ss:$0 sm:$0xff] (!%p165_p2) }
   0xc   : > { %v246_v22 = vstv (!%p165_p2), %s228_s27 }
   0xe   : > { %s405_s19 = smov (!%p191_p3, %s317_s19), 7 }
   0xf   : > { %s318_s3 = sshll.u32 %s405_s19, 3 }
  0x10   : > { %s194_s24 = scalar_lea.vmem %s399_s0, %s318_s3  ;;  %s200_s30 = scalar_lea.vmem %s403_s4, %s318_s3 }
  0x11   : > { %v202_v2 = vld [vmem:[%s194_s24] sm:$0xff]  ;;  %v204_v3 = vld [vmem:[%s194_s24 + $0x10] sm:$0xff]  ;;  %v203_v4 = vld [vmem:[%s194_s24 + $0x8] sm:$0xff] }
  0x12   : > { %v213_v5 = vsub.f32 %v202_v2, %v321_v0  ;;  %v215_v6 = vsub.f32 %v204_v3, %v321_v0  ;;  %v214_v7 = vsub.f32 %v203_v4, %v321_v0  ;;  %v205_v8 = vld [vmem:[%s194_s24 + $0x18] sm:$0xff] }
  0x13   : > { %v216_v9 = vsub.f32 %v205_v8, %v321_v0 }
  0x14   : > { %v224_v10 = vmul.f32 %v322_v1, %v213_v5  ;;  %v226_v11 = vmul.f32 %v322_v1, %v215_v6  ;;  %v225_v12 = vmul.f32 %v322_v1, %v214_v7 }
  0x15   : > { %v227_v13 = vmul.f32 %v322_v1, %v216_v9 }
  0x16   : > { %v229_v14 = vmul.f32 %v224_v10, %v224_v10  ;;  %v231_v15 = vmul.f32 %v226_v11, %v226_v11  ;;  %v230_v16 = vmul.f32 %v225_v12, %v225_v12 }
  0x17   : > { %v232_v17 = vmul.f32 %v227_v13, %v227_v13 }
  0x18   : > { %v234_v18 = vsel %vm233_vm0, %v229_v14, 0.0  ;;  %v240_v19 = vsel %vm233_vm0, %v231_v15, 0.0  ;;  %v237_v20 = vsel %vm233_vm0, %v230_v16, 0.0 }
  0x19   : > { %235 = vadd.xlane.f32.xlu0 %v234_v18  ;;  %241 = vadd.xlane.f32.xlu1 %v240_v19  ;;  %v243_v21 = vsel %vm233_vm0, %v232_v17, 0.0 }
  0x1d   : > { %238 = vadd.xlane.f32.xlu0 %v237_v20  ;;  %244 = vadd.xlane.f32.xlu1 %v243_v21 }
  0xa6   : > { %v236_v23 = vpop.xlane.xlu0 %235  ;;  %v242_v24 = vpop.xlane.xlu1 %241 }
  0xa7   : > { %v247_v25 = vsub.f32 %v246_v22, %v236_v23  ;;  %v249_v30 = vsub.f32 %v246_v22, %v242_v24 }
  0xa9   : > { %252 = vst.msk [vmem:[%s200_s30] sm:$0xff] %vm251_vm1, %v247_v25  ;;  %254 = vst.msk [vmem:[%s200_s30 + $0x10] sm:$0xff] %vm251_vm1, %v249_v30 }
  0xaa   : > { %v239_v26 = vpop.xlane.xlu0 %238  ;;  %v245_v27 = vpop.xlane.xlu1 %244 }
  0xab   : > { %v248_v28 = vsub.f32 %v246_v22, %v239_v26  ;;  %v250_v29 = vsub.f32 %v246_v22, %v245_v27 }
  0xad   : > { %253 = vst.msk [vmem:[%s200_s30 + $0x8] sm:$0xff] %vm251_vm1, %v248_v28  ;;  %255 = vst.msk [vmem:[%s200_s30 + $0x18] sm:$0xff] %vm251_vm1, %v250_v29 }
  0xae PF: > { %s15_s17 = sadd.s32 1, %s339_s17  }
  0xaf   : > { %p12_p4 = scmp.ge.s32.totalorder %s15_s17, 4  }
  0xb1   :  { %14 = sbr.rel (!%p12_p4) target bundleno = 2 (0x2), region = 66 }

</bundles_post_ra>
